<compile_context>
chip_gen: v5e
topology: v5e:2x2
jax: 0.10.0
libtpu: 0.0.40
codegen_flags: <defaults>
</compile_context>

<pallas_src>
import numpy as np
import jax
import jax.numpy as jnp
from jax.experimental import pallas as pl
from jax.experimental.pallas import tpu as pltpu


def _remove_bg_kernel(x_ref, bg_ref, rmask_ref, wmask_ref, thr_ref, o_ref):
    """One grid step = C_BLK channels x all N frames.

    x_ref    : [N, R, W] VMEM, R = C_BLK * H (C_BLK channel frames stacked on rows)
    bg_ref   : [R, W]    VMEM
    rmask_ref: [R, 2]    VMEM  col 0: up-neighbour valid   (h > 0)
                               col 1: down-neighbour valid (h < H-1)
    wmask_ref: [2, W]    VMEM  row 0: left-neighbour valid  (w > 0)
                               row 1: right-neighbour valid (w < W-1)
    thr_ref  : [1]       SMEM  threshold scalar
    o_ref    : [N, R, W] VMEM
    """
    x = x_ref[...]                                   # [N, R, W]
    bg = bg_ref[...]                                 # [R, W]
    R = x.shape[1]
    W = x.shape[2]

    # Seed mask: sum_n |x - background| > threshold, kept as exact {0,1} f32.
    s = jnp.sum(jnp.abs(x - bg), axis=0)             # [R, W]
    m = (s > thr_ref[0]).astype(jnp.float32)

    # Host-precomputed boundary-validity masks (constant across grid steps,
    # fetched once): keep circular rolls from bleeding across image edges or
    # across the channel frames stacked along the row axis.
    rmask = rmask_ref[...]                           # [R, 2]
    wmask = wmask_ref[...]                           # [2, W]
    v_up, v_dn = rmask[:, 0:1], rmask[:, 1:2]        # [R, 1]
    v_lt, v_rt = wmask[0:1, :], wmask[1:2, :]        # [1, W]

    # 5 iterations of 4-connected (cross) dilation:
    #   sublane rolls (axis 0) for up/down, lane rolls (axis 1) for left/right
    #   on the XLU; multiply/max on the VPU.  Values stay exactly {0,1}, so no
    #   re-thresholding is needed inside the loop.
    for _ in range(5):
        up    = pltpu.roll(m, 1,     axis=0) * v_up  # m[r-1, w]
        down  = pltpu.roll(m, R - 1, axis=0) * v_dn  # m[r+1, w]
        left  = pltpu.roll(m, 1,     axis=1) * v_lt  # m[r, w-1]
        right = pltpu.roll(m, W - 1, axis=1) * v_rt  # m[r, w+1]
        m = jnp.maximum(jnp.maximum(m, jnp.maximum(up, down)),
                        jnp.maximum(left, right))

    # Apply + store (mask broadcasts over the leading N frames).
    o_ref[...] = (x * m).astype(o_ref.dtype)


def _vmem_capacity_bytes():
    """Generation-aware VMEM capacity (v5e/v6e: 128 MiB, v7x: 64 MiB)."""
    try:
        cap = int(pltpu.get_tpu_info().vmem_capacity_bytes)
        if cap > 0:
            return cap
    except Exception:
        pass
    return 64 * 1024 * 1024            # conservative default (v7x physical VMEM)


def _pick_channel_block(N, C, H, W, itemsize):
    """Channels per grid step for the [N, C*H, W] layout.

    * (8,128) rule: W is always the full last dim; C_BLK*H must be a multiple
      of 8 unless C_BLK == C.
    * VMEM budget: double-buffered input + output blocks + background block,
      with last-two-dim padding, must fit a generation-aware budget.
    * Prefer >= 4 and even grid steps (v7x: 2 TensorCores), then >= 2 steps;
      among those, the largest block (biggest slabs, ~0.35 us/step overhead).
    """
    budget = _vmem_capacity_bytes() // 3
    w_pad = pl.cdiv(W, 128) * 128

    def legal(cb):
        return (cb * H) % 8 == 0 or cb == C

    def resident_bytes(cb):
        r_pad = pl.cdiv(cb * H, 8) * 8
        blk = r_pad * w_pad * itemsize
        # 2x double-buffered x-input + 2x double-buffered output + bg (x2);
        # boundary masks / SMEM threshold are negligible.
        return (4 * N + 2) * blk

    divisors = [d for d in range(1, C + 1) if C % d == 0 and legal(d)]
    if not divisors:
        return C
    fitting = [d for d in divisors if resident_bytes(d) <= budget]
    if not fitting:
        # Nothing fits the budget: smallest legal block, let vmem_limit absorb.
        # TODO(synk): two-phase / row-tiled variant for slabs larger than VMEM.
        return min(divisors)

    steps = lambda d: C // d
    for ok in (lambda d: steps(d) >= 4 and steps(d) % 2 == 0,   # v7x: 2 TCs
               lambda d: steps(d) >= 2):
        cands = [d for d in fitting if ok(d)]
        if cands:
            return max(cands)
    return max(fitting)


def remove_background(x, background, threshold):
    """x: [N, C, H, W] float32, background: [C, H, W] float32, threshold: float."""
    N, C, H, W = x.shape
    c_blk = _pick_channel_block(N, C, H, W, x.dtype.itemsize)
    n_steps = C // c_blk
    R = c_blk * H

    # Row-major [N, C, H, W] -> [N, C*H, W] and [C, H, W] -> [C*H, W]: free views.
    x3 = x.reshape(N, C * H, W)
    bg2 = background.reshape(C * H, W)
    thr = jnp.asarray([threshold], dtype=jnp.float32)

    # Host-precomputed boundary-validity masks (exact integer construction; the
    # per-block pattern repeats every H rows, so one block serves every step).
    h_idx = np.arange(R) % H
    rmask = jnp.asarray(
        np.stack([h_idx > 0, h_idx < H - 1], axis=1).astype(np.float32))  # [R, 2]
    w_idx = np.arange(W)
    wmask = jnp.asarray(
        np.stack([w_idx > 0, w_idx < W - 1], axis=0).astype(np.float32))  # [2, W]

    vmem_limit = int(min(_vmem_capacity_bytes() * 3 // 4, 96 * 1024 * 1024))

    out3 = pl.pallas_call(
        _remove_bg_kernel,
        out_shape=jax.ShapeDtypeStruct((N, C * H, W), x.dtype),
        grid=(n_steps,),
        in_specs=[
            pl.BlockSpec((N, R, W), lambda i: (0, i, 0)),          # x slab
            pl.BlockSpec((R, W), lambda i: (i, 0)),                # background
            pl.BlockSpec((R, 2), lambda i: (0, 0)),                # row-boundary masks
            pl.BlockSpec((2, W), lambda i: (0, 0)),                # col-boundary masks
            pl.BlockSpec(memory_space=pltpu.MemorySpace.SMEM),     # threshold
        ],
        out_specs=pl.BlockSpec((N, R, W), lambda i: (0, i, 0)),
        input_output_aliases={0: 0},        # PyTorch does X *= mask in place
        compiler_params=pltpu.CompilerParams(
            # NOTE: if profiling shows v7x not sharding the grid across its two
            # TensorCores, try pltpu.CORE_PARALLEL on this axis.
            dimension_semantics=("parallel",),
            vmem_limit_bytes=vmem_limit,
        ),
    )(x3, bg2, rmask, wmask, thr)
    return out3.reshape(N, C, H, W)


def _reference(x, background, threshold):
    """Pure-JAX reference mirroring the PyTorch forward (scipy dilation replaced
    by the equivalent 5x iterated 4-connected, zero-padded dilation)."""
    xp = jnp.transpose(x, (1, 2, 3, 0))                         # [C, H, W, N]
    s = jnp.sum(jnp.abs(xp - background[..., None]), axis=-1)   # [C, H, W]
    m = s > threshold

    def dilate5(mm):  # mm: [H, W] bool
        for _ in range(5):
            pd = jnp.pad(mm, 1)
            mm = (pd[1:-1, 1:-1] | pd[:-2, 1:-1] | pd[2:, 1:-1]
                  | pd[1:-1, :-2] | pd[1:-1, 2:])
        return mm

    m = jax.vmap(dilate5)(m)                                     # [C, H, W]
    out = xp * m[..., None].astype(xp.dtype)
    return jnp.transpose(out, (3, 0, 1, 2))                      # [N, C, H, W]


if __name__ == "__main__":
    key = jax.random.PRNGKey(0)
    kx, kb = jax.random.split(key)
    # Small image; W = 128 keeps the lane dimension a full vreg width.
    N, C, H, W = 2, 4, 16, 128
    threshold = 5.0   # sparse seed mask -> dilation + boundary handling exercised

    x = jax.random.normal(kx, (N, C, H, W), dtype=jnp.float32)
    # "background" is a constructor argument, not a checkpoint weight:
    # initialize it deterministically in-script.
    background = jax.random.normal(kb, (C, H, W), dtype=jnp.float32)

    ref = _reference(x, background, threshold)      # computed before the kernel
    out = remove_background(x, background, threshold)
    out = jax.block_until_ready(out)

    assert out.shape == x.shape and out.dtype == x.dtype
    np.testing.assert_allclose(np.asarray(out), np.asarray(ref), rtol=1e-6, atol=1e-6)
    print("KERNEL_OK")
</pallas_src>

<mosaic_0001>
module attributes {stable_mosaic.version = 11 : i64} {
  func.func @_remove_bg_kernel(%arg0: i32, %arg1: memref<2x16x128xf32, #tpu.memory_space<vmem>>, %arg2: memref<16x128xf32, #tpu.memory_space<vmem>>, %arg3: memref<16x2xf32, #tpu.memory_space<vmem>>, %arg4: memref<2x128xf32, #tpu.memory_space<vmem>>, %arg5: memref<1xf32, #tpu.memory_space<smem>>, %arg6: memref<2x16x128xf32, #tpu.memory_space<vmem>>) attributes {dimension_semantics = [#tpu.dimension_semantics<parallel>], iteration_bounds = array<i64: 4>, scalar_prefetch = 0 : i64, scratch_operands = 0 : i64, tpu.core_type = #tpu.core_type<tc>, window_params = [{transform_indices = @transform_0, window_bounds = array<i64: 2, 16, 128>}, {transform_indices = @transform_1, window_bounds = array<i64: 16, 128>}, {pipeline_mode = #tpu.pipeline_mode<synchronous>, transform_indices = @transform_2, window_bounds = array<i64: 16, 2>}, {pipeline_mode = #tpu.pipeline_mode<synchronous>, transform_indices = @transform_3, window_bounds = array<i64: 2, 128>}, {transform_indices = @transform_4, window_bounds = array<i64: 1>}, {transform_indices = @transform_5, window_bounds = array<i64: 2, 16, 128>}]} {
    %c0 = arith.constant 0 : index
    %c0_0 = arith.constant 0 : index
    %c0_1 = arith.constant 0 : index
    %0 = vector.load %arg1[%c0, %c0_0, %c0_1] : memref<2x16x128xf32, #tpu.memory_space<vmem>>, vector<2x16x128xf32>
    %c0_2 = arith.constant 0 : index
    %c0_3 = arith.constant 0 : index
    %1 = vector.load %arg2[%c0_2, %c0_3] : memref<16x128xf32, #tpu.memory_space<vmem>>, vector<16x128xf32>
    %2 = vector.shape_cast %1 : vector<16x128xf32> to vector<1x16x128xf32>
    %3 = vector.broadcast %2 : vector<1x16x128xf32> to vector<2x16x128xf32>
    %4 = arith.subf %0, %3 : vector<2x16x128xf32>
    %5 = math.absf %4 : vector<2x16x128xf32>
    %cst = arith.constant dense<0.000000e+00> : vector<16x128xf32>
    %6 = vector.multi_reduction <add>, %5, %cst [0] : vector<2x16x128xf32> to vector<16x128xf32>
    %c0_4 = arith.constant 0 : index
    %7 = memref.load %arg5[%c0_4] : memref<1xf32, #tpu.memory_space<smem>>
    %8 = vector.broadcast %7 : f32 to vector<16x128xf32>
    %9 = arith.cmpf ogt, %6, %8 : vector<16x128xf32>
    %10 = arith.extui %9 : vector<16x128xi1> to vector<16x128xi32>
    %11 = arith.sitofp %10 : vector<16x128xi32> to vector<16x128xf32>
    %c0_5 = arith.constant 0 : index
    %c0_6 = arith.constant 0 : index
    %12 = vector.load %arg3[%c0_5, %c0_6] : memref<16x2xf32, #tpu.memory_space<vmem>>, vector<16x2xf32>
    %c0_7 = arith.constant 0 : index
    %c0_8 = arith.constant 0 : index
    %13 = vector.load %arg4[%c0_7, %c0_8] : memref<2x128xf32, #tpu.memory_space<vmem>>, vector<2x128xf32>
    %14 = vector.extract_strided_slice %12 {offsets = [0, 0], sizes = [16, 1], strides = [1, 1]} : vector<16x2xf32> to vector<16x1xf32>
    %15 = vector.extract_strided_slice %12 {offsets = [0, 1], sizes = [16, 1], strides = [1, 1]} : vector<16x2xf32> to vector<16x1xf32>
    %16 = vector.extract_strided_slice %13 {offsets = [0, 0], sizes = [1, 128], strides = [1, 1]} : vector<2x128xf32> to vector<1x128xf32>
    %17 = vector.extract_strided_slice %13 {offsets = [1, 0], sizes = [1, 128], strides = [1, 1]} : vector<2x128xf32> to vector<1x128xf32>
    %c1_i32 = arith.constant 1 : i32
    %18 = tpu.dynamic_rotate %11 by %c1_i32 dim 0 : vector<16x128xf32>, i32 -> vector<16x128xf32>
    %19 = vector.broadcast %14 : vector<16x1xf32> to vector<16x128xf32>
    %20 = arith.mulf %18, %19 : vector<16x128xf32>
    %c15_i32 = arith.constant 15 : i32
    %21 = tpu.dynamic_rotate %11 by %c15_i32 dim 0 : vector<16x128xf32>, i32 -> vector<16x128xf32>
    %22 = vector.broadcast %15 : vector<16x1xf32> to vector<16x128xf32>
    %23 = arith.mulf %21, %22 : vector<16x128xf32>
    %c1_i32_9 = arith.constant 1 : i32
    %24 = tpu.dynamic_rotate %11 by %c1_i32_9 dim 1 : vector<16x128xf32>, i32 -> vector<16x128xf32>
    %25 = vector.broadcast %16 : vector<1x128xf32> to vector<16x128xf32>
    %26 = arith.mulf %24, %25 : vector<16x128xf32>
    %c127_i32 = arith.constant 127 : i32
    %27 = tpu.dynamic_rotate %11 by %c127_i32 dim 1 : vector<16x128xf32>, i32 -> vector<16x128xf32>
    %28 = vector.broadcast %17 : vector<1x128xf32> to vector<16x128xf32>
    %29 = arith.mulf %27, %28 : vector<16x128xf32>
    %30 = arith.maximumf %20, %23 : vector<16x128xf32>
    %31 = arith.maximumf %11, %30 : vector<16x128xf32>
    %32 = arith.maximumf %26, %29 : vector<16x128xf32>
    %33 = arith.maximumf %31, %32 : vector<16x128xf32>
    %c1_i32_10 = arith.constant 1 : i32
    %34 = tpu.dynamic_rotate %33 by %c1_i32_10 dim 0 : vector<16x128xf32>, i32 -> vector<16x128xf32>
    %35 = vector.broadcast %14 : vector<16x1xf32> to vector<16x128xf32>
    %36 = arith.mulf %34, %35 : vector<16x128xf32>
    %c15_i32_11 = arith.constant 15 : i32
    %37 = tpu.dynamic_rotate %33 by %c15_i32_11 dim 0 : vector<16x128xf32>, i32 -> vector<16x128xf32>
    %38 = vector.broadcast %15 : vector<16x1xf32> to vector<16x128xf32>
    %39 = arith.mulf %37, %38 : vector<16x128xf32>
    %c1_i32_12 = arith.constant 1 : i32
    %40 = tpu.dynamic_rotate %33 by %c1_i32_12 dim 1 : vector<16x128xf32>, i32 -> vector<16x128xf32>
    %41 = vector.broadcast %16 : vector<1x128xf32> to vector<16x128xf32>
    %42 = arith.mulf %40, %41 : vector<16x128xf32>
    %c127_i32_13 = arith.constant 127 : i32
    %43 = tpu.dynamic_rotate %33 by %c127_i32_13 dim 1 : vector<16x128xf32>, i32 -> vector<16x128xf32>
    %44 = vector.broadcast %17 : vector<1x128xf32> to vector<16x128xf32>
    %45 = arith.mulf %43, %44 : vector<16x128xf32>
    %46 = arith.maximumf %36, %39 : vector<16x128xf32>
    %47 = arith.maximumf %33, %46 : vector<16x128xf32>
    %48 = arith.maximumf %42, %45 : vector<16x128xf32>
    %49 = arith.maximumf %47, %48 : vector<16x128xf32>
    %c1_i32_14 = arith.constant 1 : i32
    %50 = tpu.dynamic_rotate %49 by %c1_i32_14 dim 0 : vector<16x128xf32>, i32 -> vector<16x128xf32>
    %51 = vector.broadcast %14 : vector<16x1xf32> to vector<16x128xf32>
    %52 = arith.mulf %50, %51 : vector<16x128xf32>
    %c15_i32_15 = arith.constant 15 : i32
    %53 = tpu.dynamic_rotate %49 by %c15_i32_15 dim 0 : vector<16x128xf32>, i32 -> vector<16x128xf32>
    %54 = vector.broadcast %15 : vector<16x1xf32> to vector<16x128xf32>
    %55 = arith.mulf %53, %54 : vector<16x128xf32>
    %c1_i32_16 = arith.constant 1 : i32
    %56 = tpu.dynamic_rotate %49 by %c1_i32_16 dim 1 : vector<16x128xf32>, i32 -> vector<16x128xf32>
    %57 = vector.broadcast %16 : vector<1x128xf32> to vector<16x128xf32>
    %58 = arith.mulf %56, %57 : vector<16x128xf32>
    %c127_i32_17 = arith.constant 127 : i32
    %59 = tpu.dynamic_rotate %49 by %c127_i32_17 dim 1 : vector<16x128xf32>, i32 -> vector<16x128xf32>
    %60 = vector.broadcast %17 : vector<1x128xf32> to vector<16x128xf32>
    %61 = arith.mulf %59, %60 : vector<16x128xf32>
    %62 = arith.maximumf %52, %55 : vector<16x128xf32>
    %63 = arith.maximumf %49, %62 : vector<16x128xf32>
    %64 = arith.maximumf %58, %61 : vector<16x128xf32>
    %65 = arith.maximumf %63, %64 : vector<16x128xf32>
    %c1_i32_18 = arith.constant 1 : i32
    %66 = tpu.dynamic_rotate %65 by %c1_i32_18 dim 0 : vector<16x128xf32>, i32 -> vector<16x128xf32>
    %67 = vector.broadcast %14 : vector<16x1xf32> to vector<16x128xf32>
    %68 = arith.mulf %66, %67 : vector<16x128xf32>
    %c15_i32_19 = arith.constant 15 : i32
    %69 = tpu.dynamic_rotate %65 by %c15_i32_19 dim 0 : vector<16x128xf32>, i32 -> vector<16x128xf32>
    %70 = vector.broadcast %15 : vector<16x1xf32> to vector<16x128xf32>
    %71 = arith.mulf %69, %70 : vector<16x128xf32>
    %c1_i32_20 = arith.constant 1 : i32
    %72 = tpu.dynamic_rotate %65 by %c1_i32_20 dim 1 : vector<16x128xf32>, i32 -> vector<16x128xf32>
    %73 = vector.broadcast %16 : vector<1x128xf32> to vector<16x128xf32>
    %74 = arith.mulf %72, %73 : vector<16x128xf32>
    %c127_i32_21 = arith.constant 127 : i32
    %75 = tpu.dynamic_rotate %65 by %c127_i32_21 dim 1 : vector<16x128xf32>, i32 -> vector<16x128xf32>
    %76 = vector.broadcast %17 : vector<1x128xf32> to vector<16x128xf32>
    %77 = arith.mulf %75, %76 : vector<16x128xf32>
    %78 = arith.maximumf %68, %71 : vector<16x128xf32>
    %79 = arith.maximumf %65, %78 : vector<16x128xf32>
    %80 = arith.maximumf %74, %77 : vector<16x128xf32>
    %81 = arith.maximumf %79, %80 : vector<16x128xf32>
    %c1_i32_22 = arith.constant 1 : i32
    %82 = tpu.dynamic_rotate %81 by %c1_i32_22 dim 0 : vector<16x128xf32>, i32 -> vector<16x128xf32>
    %83 = vector.broadcast %14 : vector<16x1xf32> to vector<16x128xf32>
    %84 = arith.mulf %82, %83 : vector<16x128xf32>
    %c15_i32_23 = arith.constant 15 : i32
    %85 = tpu.dynamic_rotate %81 by %c15_i32_23 dim 0 : vector<16x128xf32>, i32 -> vector<16x128xf32>
    %86 = vector.broadcast %15 : vector<16x1xf32> to vector<16x128xf32>
    %87 = arith.mulf %85, %86 : vector<16x128xf32>
    %c1_i32_24 = arith.constant 1 : i32
    %88 = tpu.dynamic_rotate %81 by %c1_i32_24 dim 1 : vector<16x128xf32>, i32 -> vector<16x128xf32>
    %89 = vector.broadcast %16 : vector<1x128xf32> to vector<16x128xf32>
    %90 = arith.mulf %88, %89 : vector<16x128xf32>
    %c127_i32_25 = arith.constant 127 : i32
    %91 = tpu.dynamic_rotate %81 by %c127_i32_25 dim 1 : vector<16x128xf32>, i32 -> vector<16x128xf32>
    %92 = vector.broadcast %17 : vector<1x128xf32> to vector<16x128xf32>
    %93 = arith.mulf %91, %92 : vector<16x128xf32>
    %94 = arith.maximumf %84, %87 : vector<16x128xf32>
    %95 = arith.maximumf %81, %94 : vector<16x128xf32>
    %96 = arith.maximumf %90, %93 : vector<16x128xf32>
    %97 = arith.maximumf %95, %96 : vector<16x128xf32>
    %98 = vector.shape_cast %97 : vector<16x128xf32> to vector<1x16x128xf32>
    %99 = vector.broadcast %98 : vector<1x16x128xf32> to vector<2x16x128xf32>
    %100 = arith.mulf %0, %99 : vector<2x16x128xf32>
    %c0_26 = arith.constant 0 : index
    %c0_27 = arith.constant 0 : index
    %c0_28 = arith.constant 0 : index
    %101 = vector.load %arg6[%c0_26, %c0_27, %c0_28] : memref<2x16x128xf32, #tpu.memory_space<vmem>>, vector<2x16x128xf32>
    tpu.vector_store %arg6[%c0_26, %c0_27, %c0_28], %100 {strides = array<i32>} : memref<2x16x128xf32, #tpu.memory_space<vmem>>, vector<2x16x128xf32>,
    return
  }
  func.func @transform_0(%arg0: i32) -> (i32, i32, i32) {
    %c0_i32 = arith.constant 0 : i32
    %c0_i32_0 = arith.constant 0 : i32
    %c0_i32_1 = arith.constant 0 : i32
    return %c0_i32, %arg0, %c0_i32_0 : i32, i32, i32
  }
  func.func @transform_1(%arg0: i32) -> (i32, i32) {
    %c0_i32 = arith.constant 0 : i32
    %c0_i32_0 = arith.constant 0 : i32
    return %arg0, %c0_i32 : i32, i32
  }
  func.func @transform_2(%arg0: i32) -> (i32, i32) {
    %c0_i32 = arith.constant 0 : i32
    %c0_i32_0 = arith.constant 0 : i32
    %c0_i32_1 = arith.constant 0 : i32
    return %c0_i32, %c0_i32_0 : i32, i32
  }
  func.func @transform_3(%arg0: i32) -> (i32, i32) {
    %c0_i32 = arith.constant 0 : i32
    %c0_i32_0 = arith.constant 0 : i32
    %c0_i32_1 = arith.constant 0 : i32
    return %c0_i32, %c0_i32_0 : i32, i32
  }
  func.func @transform_4(%arg0: i32) -> i32 {
    %c0_i32 = arith.constant 0 : i32
    %c0_i32_0 = arith.constant 0 : i32
    return %c0_i32 : i32
  }
  func.func @transform_5(%arg0: i32) -> (i32, i32, i32) {
    %c0_i32 = arith.constant 0 : i32
    %c0_i32_0 = arith.constant 0 : i32
    %c0_i32_1 = arith.constant 0 : i32
    return %c0_i32, %arg0, %c0_i32_0 : i32, i32, i32
  }
}

</mosaic_0001>

<bundles_post_ra>
// kernel: tpu_custom_call.1
= control target key start
LH: loop header
LB: loop body
LE: loop exit
PB: predicated region body
PF: predicated region fallthrough
CT: control target
= control target key end

     0   :  { %s1108_s0 = inlined_call_operand.hbm [shape: f32[2,64,128], index: 0, kind: input, shape index: {}, may-alias: {0,5}]   ;;  %s1109_s1 = inlined_call_operand.vmem [shape: f32[64,128], index: 1, kind: input, shape index: {}]   ;;  %s1110_s2 = inlined_call_operand.vmem [shape: f32[16,2], index: 2, kind: input, shape index: {}]   ;;  %s1111_s3 = inlined_call_operand.vmem [shape: f32[2,128], index: 3, kind: input, shape index: {}]   ;;  %s1112_s4 = inlined_call_operand.<no memory space> [shape: f32[1], index: 4, kind: input, shape index: {}]   ;;  %s1113_s5 = inlined_call_operand.hbm [shape: f32[2,64,128], index: 5, kind: output, shape index: {}, may-alias: {0,5}]  }
   0x1   :  { %10 = sst [smem:[#allocation2]] %s1112_s4 }
   0x2   :  { %11 = vsyncpa [#allocation4], 0 }
   0x3   :  { %13 = vsyncpa [#allocation4 + $0x1], 0 }
   0x4   :  { %14 = vsyncpa [#allocation5], 0 }
   0x5   :  { %16 = vsyncpa [#allocation5 + $0x1], 0  ;;  %s836_s20 = smov 0   ;;  %s838_s21 = smov 0  }
   0x6   :  { %s840_s22 = smov 0   ;;  %s842_s23 = smov 0  }
   0x7 LB: > { %s857_s4 = sadd.s32 4294967295, %s783_s23   ;;  %s638_s24 = sadd.s32 4294967294, %s783_s23   ;;  %s783_s23 = sphi %s842_s23, %s1121_s23   ;;  %s779_s22 = sphi %s840_s22, %s1120_s22   ;;  %s775_s21 = sphi %s838_s21, %s1119_s21   ;;  %s771_s20 = sphi %s836_s20, %s1118_s20  }
   0x8   : > { %s861_s25 = sadd.s32 1, %s783_s23   ;;  %s29_s26 = sadd.s32 1, %s779_s22 }
   0x9   : > { %s26_s27 = ssub.s32 %s783_s23, %s861_s25  ;;  %p36_p0 = scmp.ne.s32.totalorder %s779_s22, %s775_s21 }
   0xa   : > { %p27_p1 = scmp.eq.s32.totalorder %s26_s27, 0  ;;  %p37_p2 = scmp.eq.s32.totalorder %s783_s23, 0 }
   0xb   : > { %p42_p3 = scmp.ne.s32.totalorder %s775_s21, %s771_s20  ;;  %p43_p4 = scmp.eq.s32.totalorder %s857_s4, 0 }
   0xc   : > { %s873_s28 = scalar_select %p27_p1, %s779_s22, %s29_s26  }
   0xd   : > { %p875_p5 = por %p37_p2, %p36_p0  ;;  %p879_p6 = por %p43_p4, %p42_p3 }
   0xe   : > { %p155_p7 = scmp.eq.s32.totalorder %s857_s4, 3  ;;  %p161_p8 = scmp.eq.s32.totalorder %s638_s24, 3 }
   0xf   : > { %p640_p11 = scmp.ge.s32.totalorder %s783_s23, 4 }
  0x10   : > { %p884_p9 = por %p155_p7, %p36_p0  ;;  %p888_p10 = por %p161_p8, %p42_p3 }
  0x11   : > { %186 = sbr.rel (%p640_p11) target bundleno = 36 (0x24), region = 28 }
  0x16   : > { %s190_s8 = sand.u32 1, %s779_s22   ;;  %s658_s9 = sshll.u32 %s783_s23, 4 }
  0x17   : > { %s641_s10 = sshll.u32 %s190_s8, 5  ;;  %s199_s13 = scalar_lea.hbm %s1108_s0, %s658_s9 }
  0x18   : > { %s660_s14 = scalar_select %p875_p5, [#allocation0], [#allocation11] }
  0x19   : > { %s212_s15 = sshll.u32 %s199_s13, 4  ;;  %s194_s16 = scalar_lea.vmem [#allocation3], %s641_s10  ;;  %s213_s15 = int_to_ptr.hbm [resolvable:$true] %s212_s15 }
  0x1a   : > { %s214_s17 = sshll.u32 %s194_s16, 4  ;;  %s204_s18 = sld [smem:[%s660_s14]]   ;;  %s215_s17 = int_to_ptr.vmem [resolvable:$true] %s214_s17 }
  0x1b   : > { %s785_s19 = smov 1024   ;;  %s786_s24 = smov 256  }
  0x1c   : > { %661 = sst [smem:[#allocation8]] (%p875_p5), %s785_s19  ;;  %s787_s26 = smov 2  }
  0x1d   : > { %662 = sst [smem:[#allocation8 + $0x1]] (%p875_p5), %s786_s24  ;;  %s788_s27 = smov 128  }
  0x1e   : > { %663 = sst [smem:[#allocation8 + $0x2]] (%p875_p5), %s787_s26  ;;  %s789_s11 = smov 8  }
  0x1f   : > { %664 = sst [smem:[#allocation8 + $0x3]] (%p875_p5), %s788_s27  ;;  %s191_s12 = scalar_lea.sflag [#allocation4], %s190_s8 }
  0x20   : > { %s644_s9 = sshll.u32 %s204_s18, 26  ;;  %665 = sst [smem:[#allocation8 + $0x4]] (%p875_p5), %s788_s27 }
  0x21   : > { %s645_s10 = sadd.s32 134217728, %s644_s9  ;;  %666 = sst [smem:[#allocation8 + $0x5]] (%p875_p5), %s789_s11 }
  0x22   : > { %s790_s13 = smov [#allocation7]  }
  0x23   : > { %667 = dma.general (%p875_p5), %s213_s15, 512, %s215_s17, %s191_s12, %s790_s13, [#allocation8], %s645_s10, 0  }
  0x24 PF: > { %p646_p12 = scmp.ge.s32.totalorder %s783_s23, 1  ;;  %p244_p13 = scmp.lt.s32.totalorder %s783_s23, 5 }
  0x26   : > { %p245_p0 = pnand %p646_p12, %p244_p13 }
  0x27   : > { %s917_s14 = sand.u32 (!%p245_p0), 1, %s775_s21  }
  0x28   : > { %248 = sbr.rel (%p245_p0) target bundleno = 678 (0x2a6), region = 40  ;;  %s647_s16 = sshll.u32 (!%p245_p0), %s917_s14, 5 }
  0x29   : > { %s251_s18 = scalar_lea.sflag (!%p245_p0), [#allocation4], %s917_s14  ;;  %s254_s8 = scalar_lea.vmem (!%p245_p0), [#allocation3], %s647_s16 }
  0x2d   : > { %762 = dma.done.wait (%p879_p6), %s251_s18, 512  }
  0x2e   : > { %764 = vsyncadd (%p879_p6), %s251_s18, 4294966784  ;;  %s649_s29 = sshll.u32 %s857_s4, 1  ;;  %v791_v0 = vmov 1   ;;  %v792_v1 = vmov 0   ;;  %s311_s17 = sld [smem:[#allocation2]]  ;;  %v319_v2 = vld [vmem:[%s1110_s2] sm:$0xff]  ;;  %v324_v25 = vlaneseq }
  0x2f   : > { %733 = vset.pattern.permute.xlu1 %v791_v0  ;;  %732 = vset.pattern.permute.xlu0 %v792_v1  ;;  %p289_p1 = scmp.lt.s32.totalorder %s649_s29, 7  ;;  %v934_v3 = vld [vmem:[%s254_s8] sm:$0xff]  ;;  %v936_v4 = vld [vmem:[%s254_s8 + $0x8] sm:$0xff]  ;;  %v938_v5 = vld [vmem:[%s254_s8 + $0x10] sm:$0xff]  ;;  %v793_v21 = vmov 0.0   ;;  %s794_s11 = smov 1  }
  0x30   : > { %347 = vperm.xlu1 %733, %v319_v2   ;;  %331 = vperm.xlu0 %732, %v319_v2   ;;  %v940_v6 = vld [vmem:[%s254_s8 + $0x18] sm:$0xff]  ;;  %v320_v16 = vld [vmem:[%s1110_s2 + $0x8] sm:$0xff]  ;;  %s795_s12 = smov 127   ;;  %v951_v27 = vshrl.u32 %v324_v25, 7  ;;  %v321_v32 = vld [vmem:[%s1111_s3] sm:$0x3] }
  0x31   : > { %s1123_s29 = smov (!%p289_p1, %s649_s29), 7  ;;  %v958_v33 = vperm.slane %v321_v32, 1  ;;  %v964_v38 = vperm.slane %v321_v32, 0  ;;  %s286_s8 = scalar_lea.vmem [#allocation6], %s647_s16 }
  0x32   : > { %s650_s15 = sshll.u32 %s1123_s29, 3  ;;  %vm343_vm2 = vcmp.lt.s32.totalorder %v951_v27, 7  ;;  %vm326_vm3 = vcmp.lt.s32.totalorder %v951_v27, 1  ;;  %s515_s29 = scalar_lea.sflag [#allocation5], %s917_s14 }
  0x33   : > { %s292_s26 = scalar_lea.vmem %s1109_s1, %s650_s15 }
  0x34   : > { %v299_v7 = vld [vmem:[%s292_s26] sm:$0xff]  ;;  %v300_v8 = vld [vmem:[%s292_s26 + $0x8] sm:$0xff]  ;;  %v312_v18 = vstv %s311_s17 }
  0x35   : > { %v301_v9 = vsub.f32 %v934_v3, %v299_v7  ;;  %v302_v10 = vsub.f32 %v936_v4, %v300_v8  ;;  %v303_v11 = vsub.f32 %v938_v5, %v299_v7  ;;  %v304_v12 = vsub.f32 %v940_v6, %v300_v8 }
  0x37   : > { %v305_v13 = vand.u32 2147483647, %v301_v9  ;;  %v306_v14 = vand.u32 2147483647, %v302_v10  ;;  %v307_v15 = vand.u32 2147483647, %v303_v11 }
  0x38   : > { %v308_v17 = vand.u32 2147483647, %v304_v12  ;;  %351 = vperm.xlu1 %733, %v320_v16   ;;  %336 = vperm.xlu0 %732, %v320_v16  }
  0x39   : > { %v309_v19 = vadd.f32 %v307_v15, %v305_v13 }
  0x3a   : > { %v310_v20 = vadd.f32 %v308_v17, %v306_v14 }
  0x3b   : > { %vm313_vm0 = vcmp.gt.f32.partialorder %v309_v19, %v312_v18 }
  0x3c   : > { %vm314_vm1 = vcmp.gt.f32.partialorder %v310_v20, %v312_v18  ;;  %v651_v22 = vsel %vm313_vm0, 1.0, %v793_v21 }
  0x3d   : > { %v652_v23 = vsel %vm314_vm1, 1.0, %v793_v21  ;;  %v341_v28 = vrot.slane %v651_v22, 1  ;;  %v322_v30 = vrot.slane %v651_v22, 7 }
  0x3e   : > { %v734_v24 = vpack.i.bf16 %v652_v23, %v651_v22  ;;  %v342_v29 = vrot.slane %v652_v23, 1  ;;  %v323_v31 = vrot.slane %v652_v23, 7 }
  0x40   : > { %735 = vrot.lane.b32.xlu2 %v734_v24, %s794_s11  ;;  %744 = vset.pattern.permute.xlu0 %v791_v0  ;;  %v344_v36 = vsel %vm343_vm2, %v341_v28, %v342_v29  ;;  %v328_v37 = vsel %vm326_vm3, %v323_v31, %v322_v30  ;;  %v345_v50 = vsel %vm343_vm2, %v342_v29, %v341_v28 }
  0x41   : > { %v327_v51 = vsel %vm326_vm3, %v322_v30, %v323_v31 }
  0x48   : > { %740 = vrot.lane.b32.xlu2 %v734_v24, %s795_s12 }
  0x9a   : > { %v736_v26 = vpop.permute.xlu2 %735 }
  0x9b   : > { %v737_v39 = vunpack.i.l.bf16 %v736_v26  ;;  %v738_v52 = vunpack.i.h.bf16 %v736_v26 }
  0x9d   : > { %v361_v45 = vmul.f32 %v737_v39, %v964_v38  ;;  %v362_v59 = vmul.f32 %v738_v52, %v964_v38 }
  0xa2   : > { %v741_v34 = vpop.permute.xlu2 %740  ;;  %v966_v40 = vpop.permute.xlu1 %347 }
  0xa3   : > { %v742_v35 = vunpack.i.l.bf16 %v741_v34  ;;  %v968_v41 = vpop.permute.xlu0 %331  ;;  %v354_v43 = vmul.f32 %v966_v40, %v344_v36  ;;  %v743_v47 = vunpack.i.h.bf16 %v741_v34 }
  0xa4   : > { %v339_v44 = vmul.f32 %v968_v41, %v328_v37 }
  0xa5   : > { %v368_v42 = vmul.f32 %v742_v35, %v958_v33  ;;  %v369_v56 = vmul.f32 %v743_v47, %v958_v33 }
  0xa6   : > { %v370_v46 = vmax.f32 %v339_v44, %v354_v43 }
  0xa7   : > { %v374_v48 = vmax.f32 %v361_v45, %v368_v42  ;;  %v375_v61 = vmax.f32 %v362_v59, %v369_v56 }
  0xa8   : > { %v372_v49 = vmax.f32 %v651_v22, %v370_v46 }
  0xaa   : > { %v376_v53 = vmax.f32 %v372_v49, %v374_v48  ;;  %v978_v54 = vpop.permute.xlu1 %351 }
  0xab   : > { %v980_v55 = vpop.permute.xlu0 %336  ;;  %v355_v57 = vmul.f32 %v978_v54, %v345_v50 }
  0xac   : > { %v340_v58 = vmul.f32 %v980_v55, %v327_v51  ;;  %396 = vrot.lane.b32.xlu2 %v376_v53, %s795_s12  ;;  %390 = vrot.lane.b32.xlu0 %v376_v53, %s794_s11  ;;  %v378_v0 = vrot.slane %v376_v53, 7  ;;  %v384_v2 = vrot.slane %v376_v53, 1 }
  0xae   : > { %v371_v60 = vmax.f32 %v340_v58, %v355_v57 }
  0xb0   : > { %v373_v62 = vmax.f32 %v652_v23, %v371_v60 }
  0xb2   : > { %v377_v63 = vmax.f32 %v373_v62, %v375_v61 }
  0xb4   : > { %v379_v1 = vrot.slane %v377_v63, 7  ;;  %398 = vrot.lane.b32.xlu0 %v377_v63, %s795_s12  ;;  %392 = vrot.lane.b32.xlu1 %v377_v63, %s794_s11  ;;  %v385_v7 = vrot.slane %v377_v63, 1 }
  0xb6   : > { %v380_v8 = vsel %vm326_vm3, %v378_v0, %v379_v1  ;;  %v381_v9 = vsel %vm326_vm3, %v379_v1, %v378_v0  ;;  %v386_v10 = vsel %vm343_vm2, %v384_v2, %v385_v7  ;;  %v387_v11 = vsel %vm343_vm2, %v385_v7, %v384_v2 }
  0xb7   : > { %v383_v12 = vmul.f32 %v380_v8, %v980_v55  ;;  %v382_v13 = vmul.f32 %v381_v9, %v968_v41  ;;  %v388_v14 = vmul.f32 %v386_v10, %v966_v40  ;;  %v389_v15 = vmul.f32 %v387_v11, %v978_v54 }
  0xb9   : > { %v402_v16 = vmax.f32 %v382_v13, %v388_v14  ;;  %v403_v17 = vmax.f32 %v383_v12, %v389_v15 }
  0xbb   : > { %v404_v18 = vmax.f32 %v376_v53, %v402_v16  ;;  %v405_v19 = vmax.f32 %v377_v63, %v403_v17 }
 0x106   : > { %v397_v20 = vpop.permute.xlu2 %396 }
 0x107   : > { %v400_v22 = vmul.f32 %v397_v20, %v958_v33 }
 0x11e   : > { %v391_v21 = vpop.permute.xlu0 %390 }
 0x11f   : > { %v394_v23 = vmul.f32 %v391_v21, %v964_v38 }
 0x121   : > { %v406_v24 = vmax.f32 %v394_v23, %v400_v22 }
 0x123   : > { %v408_v25 = vmax.f32 %v404_v18, %v406_v24 }
 0x125   : > { %428 = vrot.lane.b32.xlu0 %v408_v25, %s795_s12  ;;  %422 = vrot.lane.b32.xlu1 %v408_v25, %s794_s11  ;;  %v410_v34 = vrot.slane %v408_v25, 7  ;;  %v416_v36 = vrot.slane %v408_v25, 1 }
 0x126   : > { %v399_v26 = vpop.permute.xlu0 %398  ;;  %v393_v28 = vpop.permute.xlu1 %392 }
 0x127   : > { %v401_v29 = vmul.f32 %v399_v26, %v958_v33  ;;  %v395_v30 = vmul.f32 %v393_v28, %v964_v38 }
 0x129   : > { %v407_v31 = vmax.f32 %v395_v30, %v401_v29 }
 0x12b   : > { %v409_v32 = vmax.f32 %v405_v19, %v407_v31 }
 0x12d   : > { %430 = vrot.lane.b32.xlu1 %v409_v32, %s795_s12  ;;  %424 = vrot.lane.b32.xlu2 %v409_v32, %s794_s11  ;;  %v411_v35 = vrot.slane %v409_v32, 7  ;;  %v417_v37 = vrot.slane %v409_v32, 1 }
 0x12f   : > { %v413_v39 = vsel %vm326_vm3, %v411_v35, %v410_v34  ;;  %v418_v42 = vsel %vm343_vm2, %v416_v36, %v417_v37  ;;  %v412_v43 = vsel %vm326_vm3, %v410_v34, %v411_v35  ;;  %v419_v44 = vsel %vm343_vm2, %v417_v37, %v416_v36 }
 0x130   : > { %v414_v45 = vmul.f32 %v413_v39, %v968_v41  ;;  %v420_v46 = vmul.f32 %v418_v42, %v966_v40  ;;  %v415_v47 = vmul.f32 %v412_v43, %v980_v55  ;;  %v421_v48 = vmul.f32 %v419_v44, %v978_v54 }
 0x132   : > { %v434_v49 = vmax.f32 %v414_v45, %v420_v46  ;;  %v435_v50 = vmax.f32 %v415_v47, %v421_v48 }
 0x134   : > { %v436_v51 = vmax.f32 %v408_v25, %v434_v49  ;;  %v437_v52 = vmax.f32 %v409_v32, %v435_v50 }
 0x187   : > { %v425_v61 = vpop.permute.xlu2 %424 }
 0x188   : > { %v427_v63 = vmul.f32 %v425_v61, %v964_v38 }
 0x197   : > { %v429_v53 = vpop.permute.xlu0 %428  ;;  %v423_v56 = vpop.permute.xlu1 %422 }
 0x198   : > { %v432_v57 = vmul.f32 %v429_v53, %v958_v33  ;;  %v426_v58 = vmul.f32 %v423_v56, %v964_v38 }
 0x19a   : > { %v438_v59 = vmax.f32 %v426_v58, %v432_v57 }
 0x19c   : > { %v440_v60 = vmax.f32 %v436_v51, %v438_v59 }
 0x19e   : > { %460 = vrot.lane.b32.xlu1 %v440_v60, %s795_s12  ;;  %454 = vrot.lane.b32.xlu2 %v440_v60, %s794_s11  ;;  %v442_v7 = vrot.slane %v440_v60, 7  ;;  %v448_v9 = vrot.slane %v440_v60, 1 }
 0x19f   : > { %v431_v62 = vpop.permute.xlu1 %430 }
 0x1a0   : > { %v433_v0 = vmul.f32 %v431_v62, %v958_v33 }
 0x1a2   : > { %v439_v1 = vmax.f32 %v427_v63, %v433_v0 }
 0x1a4   : > { %v441_v2 = vmax.f32 %v437_v52, %v439_v1 }
 0x1a6   : > { %462 = vrot.lane.b32.xlu2 %v441_v2, %s795_s12  ;;  %456 = vrot.lane.b32.xlu0 %v441_v2, %s794_s11  ;;  %v443_v8 = vrot.slane %v441_v2, 7  ;;  %v449_v10 = vrot.slane %v441_v2, 1 }
 0x1a8   : > { %v445_v11 = vsel %vm326_vm3, %v443_v8, %v442_v7  ;;  %v450_v12 = vsel %vm343_vm2, %v448_v9, %v449_v10  ;;  %v444_v13 = vsel %vm326_vm3, %v442_v7, %v443_v8  ;;  %v451_v14 = vsel %vm343_vm2, %v449_v10, %v448_v9 }
 0x1a9   : > { %v446_v15 = vmul.f32 %v445_v11, %v968_v41  ;;  %v452_v16 = vmul.f32 %v450_v12, %v966_v40  ;;  %v447_v17 = vmul.f32 %v444_v13, %v980_v55  ;;  %v453_v18 = vmul.f32 %v451_v14, %v978_v54 }
 0x1ab   : > { %v466_v19 = vmax.f32 %v446_v15, %v452_v16  ;;  %v467_v20 = vmax.f32 %v447_v17, %v453_v18 }
 0x1ad   : > { %v468_v21 = vmax.f32 %v440_v60, %v466_v19  ;;  %v469_v22 = vmax.f32 %v441_v2, %v467_v20 }
 0x1f8   : > { %v455_v23 = vpop.permute.xlu2 %454 }
 0x1f9   : > { %v458_v25 = vmul.f32 %v455_v23, %v964_v38 }
 0x200   : > { %v463_v30 = vpop.permute.xlu2 %462 }
 0x201   : > { %v465_v32 = vmul.f32 %v463_v30, %v958_v33 }
 0x210   : > { %v461_v24 = vpop.permute.xlu1 %460 }
 0x211   : > { %v464_v26 = vmul.f32 %v461_v24, %v958_v33 }
 0x213   : > { %v470_v28 = vmax.f32 %v458_v25, %v464_v26 }
 0x215   : > { %v472_v29 = vmax.f32 %v468_v21, %v470_v28 }
 0x217   : > { %492 = vrot.lane.b32.xlu2 %v472_v29, %s795_s12  ;;  %486 = vrot.lane.b32.xlu0 %v472_v29, %s794_s11  ;;  %v474_v37 = vrot.slane %v472_v29, 7  ;;  %v480_v42 = vrot.slane %v472_v29, 1 }
 0x218   : > { %v457_v31 = vpop.permute.xlu0 %456 }
 0x219   : > { %v459_v34 = vmul.f32 %v457_v31, %v964_v38 }
 0x21b   : > { %v471_v35 = vmax.f32 %v459_v34, %v465_v32 }
 0x21d   : > { %v473_v36 = vmax.f32 %v469_v22, %v471_v35 }
 0x21f   : > { %494 = vrot.lane.b32.xlu0 %v473_v36, %s795_s12  ;;  %488 = vrot.lane.b32.xlu1 %v473_v36, %s794_s11  ;;  %v475_v39 = vrot.slane %v473_v36, 7  ;;  %v481_v43 = vrot.slane %v473_v36, 1 }
 0x221   : > { %v477_v44 = vsel %vm326_vm3, %v475_v39, %v474_v37  ;;  %v482_v45 = vsel %vm343_vm2, %v480_v42, %v481_v43  ;;  %v476_v46 = vsel %vm326_vm3, %v474_v37, %v475_v39  ;;  %v483_v47 = vsel %vm343_vm2, %v481_v43, %v480_v42 }
 0x222   : > { %v478_v48 = vmul.f32 %v477_v44, %v968_v41  ;;  %v484_v49 = vmul.f32 %v482_v45, %v966_v40  ;;  %v479_v50 = vmul.f32 %v476_v46, %v980_v55  ;;  %v485_v51 = vmul.f32 %v483_v47, %v978_v54 }
 0x224   : > { %v498_v52 = vmax.f32 %v478_v48, %v484_v49  ;;  %v499_v53 = vmax.f32 %v479_v50, %v485_v51 }
 0x226   : > { %v500_v56 = vmax.f32 %v472_v29, %v498_v52  ;;  %v501_v57 = vmax.f32 %v473_v36, %v499_v53 }
 0x271   : > { %v493_v58 = vpop.permute.xlu2 %492 }
 0x272   : > { %v496_v60 = vmul.f32 %v493_v58, %v958_v33 }
 0x289   : > { %v487_v59 = vpop.permute.xlu0 %486 }
 0x28a   : > { %v490_v27 = vmul.f32 %v487_v59, %v964_v38 }
 0x28c   : > { %v502_v61 = vmax.f32 %v490_v27, %v496_v60 }
 0x28e   : > { %v504_v62 = vmax.f32 %v500_v56, %v502_v61 }
 0x290   : > { %v506_v40 = vmul.f32 %v504_v62, %v934_v3  ;;  %v508_v41 = vmul.f32 %v504_v62, %v938_v5 }
 0x291   : > { %v495_v55 = vpop.permute.xlu0 %494  ;;  %v489_v63 = vpop.permute.xlu1 %488 }
 0x292   : > { %510 = vst [vmem:[%s286_s8] sm:$0xff] %v506_v40  ;;  %v497_v54 = vmul.f32 %v495_v55, %v958_v33  ;;  %v491_v0 = vmul.f32 %v489_v63, %v964_v38 }
 0x293   : > { %512 = vst [vmem:[%s286_s8 + $0x10] sm:$0xff] %v508_v41 }
 0x294   : > { %v503_v1 = vmax.f32 %v491_v0, %v497_v54 }
 0x296   : > { %v505_v2 = vmax.f32 %v501_v57, %v503_v1 }
 0x298   : > { %v507_v7 = vmul.f32 %v505_v2, %v936_v4  ;;  %v509_v8 = vmul.f32 %v505_v2, %v940_v6 }
 0x29a   : > { %511 = vst [vmem:[%s286_s8 + $0x8] sm:$0xff] %v507_v7 }
 0x29b   : > { %513 = vst [vmem:[%s286_s8 + $0x18] sm:$0xff] %v509_v8 }
 0x29c   : > { %s659_s16 = sshll.u32 %s857_s4, 4  ;;  %s537_s15 = sshll.u32 %s286_s8, 4  ;;  %s538_s15 = int_to_ptr.vmem [resolvable:$true] %s537_s15 }
 0x29d   : > { %s526_s24 = scalar_lea.hbm %s1113_s5, %s659_s16  ;;  %s796_s27 = smov 256  }
 0x29e   : > { %s539_s26 = sshll.u32 %s526_s24, 4  ;;  %669 = sst [smem:[#allocation10]] (%p884_p9), %s796_s27  ;;  %s540_s26 = int_to_ptr.hbm [resolvable:$true] %s539_s26 }
 0x29f   : > { %s797_s14 = smov 1024   ;;  %s798_s9 = smov 2  }
 0x2a0   : > { %670 = sst [smem:[#allocation10 + $0x1]] (%p884_p9), %s797_s14  ;;  %s799_s4 = smov 128  }
 0x2a1   : > { %671 = sst [smem:[#allocation10 + $0x2]] (%p884_p9), %s798_s9  ;;  %s800_s30 = smov 8  }
 0x2a2   : > { %672 = sst [smem:[#allocation10 + $0x3]] (%p884_p9), %s799_s4  ;;  %s801_s10 = smov [#allocation9]  }
 0x2a3   : > { %673 = sst [smem:[#allocation10 + $0x4]] (%p884_p9), %s799_s4  ;;  %s802_s11 = smov 0  }
 0x2a4   : > { %674 = sst [smem:[#allocation10 + $0x5]] (%p884_p9), %s800_s30 }
 0x2a5   : > { %675 = dma.general (%p884_p9), %s538_s15, 512, %s540_s26, %s515_s29, %s801_s10, [#allocation10], %s802_s11, 0  }
 0x2a6 PF: > { %p681_p2 = scmp.ge.s32.totalorder %s783_s23, 2  ;;  %s567_s12 = sand.u32 1, %s771_s20  }
 0x2a7   : > { %s568_s13 = scalar_lea.sflag [#allocation5], %s567_s12 }
 0x2a8   : > { %p678_p3 = pnand %p681_p2, %p888_p10 }
 0x2aa   : > { %p679_p4 = pneg %p678_p3 }
 0x2ac   : > { %766 = dma.done.wait (%p679_p4), %s568_s13, 512  }
 0x2ad   : > { %768 = vsyncadd (%p679_p4), %s568_s13, 4294966784  ;;  %p19_p5 = scmp.ge.s32.totalorder %s861_s25, 6   ;;  %s1118_s20 = smov %s775_s21 }
 0x2ae   : > { %s1119_s21 = smov %s779_s22  ;;  %s1120_s22 = smov %s873_s28 }
 0x2af   : > { %s1121_s23 = smov %s861_s25  ;;  %21 = sbr.rel (!%p19_p5) target bundleno = 7 (0x7), region = 98 }
 0x2b4   :  { %574 = vsyncpa [#allocation4], 1 }
 0x2b5   :  { %576 = vsyncpa [#allocation4 + $0x1], 1 }
 0x2b6   :  { %577 = vsyncpa [#allocation5], 1 }
 0x2b7   :  { %579 = vsyncpa [#allocation5 + $0x1], 1 }

</bundles_post_ra>
